<compile_context>
chip_gen: v7x
topology: tpu7x:2x2x1
jax: 0.10.0
libtpu: 0.0.40
codegen_flags: <defaults>
</compile_context>

<pallas_src>
import jax
import jax.numpy as jnp
from jax import lax
from jax.experimental import pallas as pl
from jax.experimental.pallas import tpu as pltpu

EPS = 1e-5
_VMEM_LIMIT = 48 * 1024 * 1024  # safe on v5e/v6e (128 MiB) and v7x (64 MiB)


# ---------------------------------------------------------------------------
# Pass 1: tiled matmul + per-channel sum / sum-of-squares accumulation
# ---------------------------------------------------------------------------
def _matmul_stats_kernel(x_ref, w_ref, y_ref, sum_ref, sq_ref, acc_s, acc_q):
    i = pl.program_id(0)

    @pl.when(i == 0)
    def _():
        acc_s[...] = jnp.zeros_like(acc_s)
        acc_q[...] = jnp.zeros_like(acc_q)

    y = jnp.dot(x_ref[...], w_ref[...], preferred_element_type=jnp.float32)
    y_ref[...] = y
    acc_s[...] += jnp.sum(y, axis=0, keepdims=True)
    acc_q[...] += jnp.sum(y * y, axis=0, keepdims=True)

    @pl.when(i == pl.num_programs(0) - 1)
    def _():
        sum_ref[...] = acc_s[...]
        sq_ref[...] = acc_q[...]


def matmul_with_stats(x2d, w, tm):
    """(M, Cin)bf16 @ (Cin, Cout)bf16 -> y f32, per-channel sum & sum-of-squares."""
    M, Cin = x2d.shape
    Cout = w.shape[1]
    assert M % tm == 0
    return pl.pallas_call(
        _matmul_stats_kernel,
        out_shape=(jax.ShapeDtypeStruct((M, Cout), jnp.float32),
                   jax.ShapeDtypeStruct((1, Cout), jnp.float32),
                   jax.ShapeDtypeStruct((1, Cout), jnp.float32)),
        grid=(M // tm,),
        in_specs=[pl.BlockSpec((tm, Cin), lambda i: (i, 0)),
                  pl.BlockSpec((Cin, Cout), lambda i: (0, 0))],   # grid-invariant weight
        out_specs=(pl.BlockSpec((tm, Cout), lambda i: (i, 0)),
                   pl.BlockSpec((1, Cout), lambda i: (0, 0)),
                   pl.BlockSpec((1, Cout), lambda i: (0, 0))),
        scratch_shapes=[pltpu.VMEM((1, Cout), jnp.float32),
                        pltpu.VMEM((1, Cout), jnp.float32)],
        # stats accumulate across the M axis -> must stay sequential.
        compiler_params=pltpu.CompilerParams(
            dimension_semantics=("arbitrary",),
            vmem_limit_bytes=_VMEM_LIMIT),
    )(x2d, w)


# ---------------------------------------------------------------------------
# Pass 1 (conv2): 3x3 conv via halo / shifted-matmul accumulation + stats
# ---------------------------------------------------------------------------
def _conv3x3_stats_kernel(top_ref, mid_ref, bot_ref, w_ref,
                          y_ref, sum_ref, sq_ref, acc_s, acc_q):
    n = pl.program_id(0)
    h = pl.program_id(1)

    @pl.when((n == 0) & (h == 0))
    def _():
        acc_s[...] = jnp.zeros_like(acc_s)
        acc_q[...] = jnp.zeros_like(acc_q)

    Wout = y_ref.shape[2]
    P = y_ref.shape[3]
    rows = (top_ref[...][0, 0], mid_ref[...][0, 0], bot_ref[...][0, 0])  # (W+2, P) bf16
    w = w_ref[...]                                                       # (3,3,P,P) bf16

    acc = jnp.zeros((Wout, P), jnp.float32)
    for kh in range(3):
        row = rows[kh]
        for kw in range(3):
            acc = acc + jnp.dot(row[kw:kw + Wout, :], w[kh, kw],
                                preferred_element_type=jnp.float32)

    y_ref[...] = acc[None, None]
    acc_s[...] += jnp.sum(acc, axis=0, keepdims=True)
    acc_q[...] += jnp.sum(acc * acc, axis=0, keepdims=True)

    @pl.when((n == pl.num_programs(0) - 1) & (h == pl.num_programs(1) - 1))
    def _():
        sum_ref[...] = acc_s[...]
        sq_ref[...] = acc_q[...]


def conv3x3_with_stats(y_pad, w2):
    """y_pad: (N, H+2, W+2, P) bf16 zero-padded NHWC; w2: (3,3,P,P) bf16 (HWIO)."""
    N, Hp2, Wp2, P = y_pad.shape
    H, W = Hp2 - 2, Wp2 - 2

    def row_spec(dh):
        return pl.BlockSpec((1, 1, Wp2, P), lambda n, h, dh=dh: (n, h + dh, 0, 0))

    return pl.pallas_call(
        _conv3x3_stats_kernel,
        out_shape=(jax.ShapeDtypeStruct((N, H, W, P), jnp.float32),
                   jax.ShapeDtypeStruct((1, P), jnp.float32),
                   jax.ShapeDtypeStruct((1, P), jnp.float32)),
        grid=(N, H),
        in_specs=[row_spec(0), row_spec(1), row_spec(2),
                  pl.BlockSpec((3, 3, P, P), lambda n, h: (0, 0, 0, 0))],
        out_specs=(pl.BlockSpec((1, 1, W, P), lambda n, h: (n, h, 0, 0)),
                   pl.BlockSpec((1, P), lambda n, h: (0, 0)),
                   pl.BlockSpec((1, P), lambda n, h: (0, 0))),
        scratch_shapes=[pltpu.VMEM((1, P), jnp.float32),
                        pltpu.VMEM((1, P), jnp.float32)],
        compiler_params=pltpu.CompilerParams(
            dimension_semantics=("arbitrary", "arbitrary"),
            vmem_limit_bytes=_VMEM_LIMIT),
    )(y_pad, y_pad, y_pad, w2)


# ---------------------------------------------------------------------------
# Pass 2: normalize (precomputed scale/bias) + ReLU [+ residual add]
# ---------------------------------------------------------------------------
def _scale_bias_relu_kernel(y_ref, sc_ref, bi_ref, o_ref):
    o_ref[...] = jnp.maximum(y_ref[...] * sc_ref[...] + bi_ref[...],
                             0.0).astype(o_ref.dtype)


def _scale_bias_add_relu_kernel(y_ref, sc_ref, bi_ref, id_ref, o_ref):
    o_ref[...] = jnp.maximum(
        y_ref[...] * sc_ref[...] + bi_ref[...] + id_ref[...], 0.0).astype(o_ref.dtype)


def bn_relu(y, scale, bias, tm, out_dtype):
    M, C = y.shape
    assert M % tm == 0
    return pl.pallas_call(
        _scale_bias_relu_kernel,
        out_shape=jax.ShapeDtypeStruct((M, C), out_dtype),
        grid=(M // tm,),
        in_specs=[pl.BlockSpec((tm, C), lambda i: (i, 0)),
                  pl.BlockSpec((1, C), lambda i: (0, 0)),
                  pl.BlockSpec((1, C), lambda i: (0, 0))],
        out_specs=pl.BlockSpec((tm, C), lambda i: (i, 0)),
        compiler_params=pltpu.CompilerParams(
            dimension_semantics=("parallel",),       # shards across TCs on v7x
            vmem_limit_bytes=_VMEM_LIMIT),
    )(y, scale, bias)


def bn_add_relu(y, scale, bias, identity, tm, out_dtype):
    M, C = y.shape
    assert M % tm == 0
    return pl.pallas_call(
        _scale_bias_add_relu_kernel,
        out_shape=jax.ShapeDtypeStruct((M, C), out_dtype),
        grid=(M // tm,),
        in_specs=[pl.BlockSpec((tm, C), lambda i: (i, 0)),
                  pl.BlockSpec((1, C), lambda i: (0, 0)),
                  pl.BlockSpec((1, C), lambda i: (0, 0)),
                  pl.BlockSpec((tm, C), lambda i: (i, 0))],
        out_specs=pl.BlockSpec((tm, C), lambda i: (i, 0)),
        compiler_params=pltpu.CompilerParams(
            dimension_semantics=("parallel",),
            vmem_limit_bytes=_VMEM_LIMIT),
    )(y, scale, bias, identity)


# ---------------------------------------------------------------------------
# Glue
# ---------------------------------------------------------------------------
def _pick_tile(M):
    for t in (1024, 512, 256, 128, 64, 32, 16, 8):
        if M % t == 0:
            return t
    return M


def _affine_from_stats(s, q, count, gamma, beta):
    """Fold BN batch stats + gamma/beta into a single scale/bias (f32, tiny)."""
    mean = s / count
    var = jnp.maximum(q / count - mean * mean, 0.0)   # biased var, PyTorch train-mode
    scale = gamma * lax.rsqrt(var + EPS)
    bias = beta - mean * scale
    return scale, bias


def bottleneck_forward(x_nchw, params, tm=None):
    N, Cin, H, W = x_nchw.shape
    P = params["w1"].shape[1]
    Cout = 4 * P
    assert Cin == Cout, "downsample is None => inplanes must equal planes*4"

    x_nhwc = jnp.transpose(x_nchw, (0, 2, 3, 1)).astype(jnp.float32)
    M = N * H * W
    x2d = x_nhwc.reshape(M, Cin)
    tm = tm or _pick_tile(M)

    x_bf = x2d.astype(jnp.bfloat16)
    w1 = params["w1"].astype(jnp.bfloat16)
    w2 = params["w2"].astype(jnp.bfloat16)      # (3,3,P,P) HWIO
    w3 = params["w3"].astype(jnp.bfloat16)

    # conv1 (1x1) + bn1 + relu
    y1, s1, q1 = matmul_with_stats(x_bf, w1, tm)
    sc1, bi1 = _affine_from_stats(s1, q1, M, params["g1"], params["b1"])
    y1n = bn_relu(y1, sc1, bi1, tm, jnp.bfloat16)                     # (M, P) bf16

    # conv2 (3x3, stride=1, pad=1) + bn2 + relu — halo kernel, no im2col blow-up.
    # (the zero-pad is the only plain-JAX activation round-trip left; emitting
    #  conv1 pass-2 directly into the padded layout would remove it too)
    y1_pad = jnp.pad(y1n.reshape(N, H, W, P), ((0, 0), (1, 1), (1, 1), (0, 0)))
    y2, s2, q2 = conv3x3_with_stats(y1_pad, w2)
    sc2, bi2 = _affine_from_stats(s2, q2, M, params["g2"], params["b2"])
    y2n = bn_relu(y2.reshape(M, P), sc2, bi2, tm, jnp.bfloat16)       # (M, P) bf16

    # conv3 (1x1) + bn3 + residual add + relu (residual fused into pass 2)
    y3, s3, q3 = matmul_with_stats(y2n, w3, tm)
    sc3, bi3 = _affine_from_stats(s3, q3, M, params["g3"], params["b3"])
    out2d = bn_add_relu(y3, sc3, bi3, x2d, tm, jnp.float32)           # (M, 4P) f32

    return jnp.transpose(out2d.reshape(N, H, W, Cout), (0, 3, 1, 2))


# ---------------------------------------------------------------------------
# Deterministic parameter init (matches nn.Module shapes)
# ---------------------------------------------------------------------------
def init_params(key, inplanes, planes):
    exp = 4
    ks = jax.random.split(key, 9)
    # PyTorch conv weights: (out, in, kh, kw) -> matmul / HWIO layouts.
    w1_pt = 0.1 * jax.random.normal(ks[0], (planes, inplanes, 1, 1), jnp.float32)
    w2_pt = 0.1 * jax.random.normal(ks[1], (planes, planes, 3, 3), jnp.float32)
    w3_pt = 0.1 * jax.random.normal(ks[2], (planes * exp, planes, 1, 1), jnp.float32)

    w1 = jnp.transpose(w1_pt[:, :, 0, 0], (1, 0))          # (Cin, P)
    w2 = jnp.transpose(w2_pt, (2, 3, 1, 0))                # (3, 3, P_in, P_out) HWIO
    w3 = jnp.transpose(w3_pt[:, :, 0, 0], (1, 0))          # (P, 4P)

    def affine(kg, kb, c):
        g = 1.0 + 0.1 * jax.random.normal(kg, (1, c), jnp.float32)
        b = 0.1 * jax.random.normal(kb, (1, c), jnp.float32)
        return g, b

    g1, b1 = affine(ks[3], ks[4], planes)
    g2, b2 = affine(ks[5], ks[6], planes)
    g3, b3 = affine(ks[7], ks[8], planes * exp)

    return dict(w1=w1, w2=w2, w3=w3, g1=g1, b1=b1, g2=g2, b2=b2, g3=g3, b3=b3)


# ---------------------------------------------------------------------------
# Pure-JAX reference (same bf16-matmul / f32-BN recipe) for sanity checking
# ---------------------------------------------------------------------------
def bottleneck_reference(x_nchw, params):
    x = jnp.transpose(x_nchw, (0, 2, 3, 1)).astype(jnp.float32)  # NHWC

    def bn(y, g, b):
        mean = jnp.mean(y, axis=(0, 1, 2), keepdims=True)
        var = jnp.mean(jnp.square(y - mean), axis=(0, 1, 2), keepdims=True)
        scale = g.reshape(1, 1, 1, -1) * lax.rsqrt(var + EPS)
        bias = b.reshape(1, 1, 1, -1) - mean * scale
        return y * scale + bias

    y = jnp.einsum("nhwc,cp->nhwp", x.astype(jnp.bfloat16),
                   params["w1"].astype(jnp.bfloat16),
                   preferred_element_type=jnp.float32)
    y = jax.nn.relu(bn(y, params["g1"], params["b1"])).astype(jnp.bfloat16)

    y = lax.conv_general_dilated(
        y, params["w2"].astype(jnp.bfloat16),
        window_strides=(1, 1), padding=((1, 1), (1, 1)),
        dimension_numbers=("NHWC", "HWIO", "NHWC"),
        preferred_element_type=jnp.float32)
    y = jax.nn.relu(bn(y, params["g2"], params["b2"])).astype(jnp.bfloat16)

    y = jnp.einsum("nhwp,pq->nhwq", y, params["w3"].astype(jnp.bfloat16),
                   preferred_element_type=jnp.float32)
    y = bn(y, params["g3"], params["b3"])
    y = jax.nn.relu(y + x)
    return jnp.transpose(y, (0, 3, 1, 2))


if __name__ == "__main__":
    # Shapes consistent with Bottleneck(inplanes=16, planes=4): output channels
    # = planes * expansion = 16 == inplanes, so the residual add works.
    # NOTE: toy channel counts (P=4) are not lane-dense; at real DeepLab widths
    # (P=256/512) every last dim is already a multiple of 128.
    N, inplanes, planes, H, W = 2, 16, 4, 16, 16

    key = jax.random.PRNGKey(0)
    kx, kp = jax.random.split(key)
    x = jax.random.normal(kx, (N, inplanes, H, W), jnp.float32)   # NCHW input
    params = init_params(kp, inplanes, planes)

    # tm=128 -> 4 M-tiles at M=512: exercises the multi-tile stat accumulation.
    out = jax.block_until_ready(bottleneck_forward(x, params, tm=128))
    ref = jax.block_until_ready(bottleneck_reference(x, params))

    assert out.shape == (N, inplanes, H, W)
    err = jnp.max(jnp.abs(out - ref))
    assert jnp.allclose(out, ref, rtol=2e-2, atol=2e-2), f"max abs diff {err}"

    print("KERNEL_OK")
</pallas_src>

<mosaic_0001>
module attributes {stable_mosaic.version = 11 : i64} {
  func.func @_matmul_stats_kernel(%arg0: i32, %arg1: memref<128x16xbf16, #tpu.memory_space<vmem>>, %arg2: memref<16x4xbf16, #tpu.memory_space<vmem>>, %arg3: memref<128x4xf32, #tpu.memory_space<vmem>>, %arg4: memref<1x4xf32, #tpu.memory_space<vmem>>, %arg5: memref<1x4xf32, #tpu.memory_space<vmem>>, %arg6: memref<1x4xf32, #tpu.memory_space<vmem>>, %arg7: memref<1x4xf32, #tpu.memory_space<vmem>>) attributes {dimension_semantics = [#tpu.dimension_semantics<arbitrary>], iteration_bounds = array<i64: 4>, scalar_prefetch = 0 : i64, scratch_operands = 2 : i64, tpu.core_type = #tpu.core_type<tc>, window_params = [{transform_indices = @transform_0, window_bounds = array<i64: 128, 16>}, {pipeline_mode = #tpu.pipeline_mode<synchronous>, transform_indices = @transform_1, window_bounds = array<i64: 16, 4>}, {transform_indices = @transform_2, window_bounds = array<i64: 128, 4>}, {pipeline_mode = #tpu.pipeline_mode<synchronous>, transform_indices = @transform_3, window_bounds = array<i64: 1, 4>}, {pipeline_mode = #tpu.pipeline_mode<synchronous>, transform_indices = @transform_4, window_bounds = array<i64: 1, 4>}]} {
    %c0_i32 = arith.constant 0 : i32
    %0 = arith.cmpi eq, %arg0, %c0_i32 : i32
    %1 = arith.extui %0 : i1 to i32
    %c0_i32_0 = arith.constant 0 : i32
    %2 = arith.cmpi ne, %1, %c0_i32_0 : i32
    scf.if %2 {
      %cst_17 = arith.constant 0.000000e+00 : f32
      %21 = vector.broadcast %cst_17 : f32 to vector<1x4xf32>
      %c0_18 = arith.constant 0 : index
      %c0_19 = arith.constant 0 : index
      %22 = vector.load %arg6[%c0_18, %c0_19] : memref<1x4xf32, #tpu.memory_space<vmem>>, vector<1x4xf32>
      tpu.vector_store %arg6[%c0_18, %c0_19], %21 {strides = array<i32>} : memref<1x4xf32, #tpu.memory_space<vmem>>, vector<1x4xf32>,
      %cst_20 = arith.constant 0.000000e+00 : f32
      %23 = vector.broadcast %cst_20 : f32 to vector<1x4xf32>
      %c0_21 = arith.constant 0 : index
      %c0_22 = arith.constant 0 : index
      %24 = vector.load %arg7[%c0_21, %c0_22] : memref<1x4xf32, #tpu.memory_space<vmem>>, vector<1x4xf32>
      tpu.vector_store %arg7[%c0_21, %c0_22], %23 {strides = array<i32>} : memref<1x4xf32, #tpu.memory_space<vmem>>, vector<1x4xf32>,
    } else {
    }
    %c0 = arith.constant 0 : index
    %c0_1 = arith.constant 0 : index
    %3 = vector.load %arg1[%c0, %c0_1] : memref<128x16xbf16, #tpu.memory_space<vmem>>, vector<128x16xbf16>
    %c0_2 = arith.constant 0 : index
    %c0_3 = arith.constant 0 : index
    %4 = vector.load %arg2[%c0_2, %c0_3] : memref<16x4xbf16, #tpu.memory_space<vmem>>, vector<16x4xbf16>
    %cst = arith.constant dense<0.000000e+00> : vector<128x4xf32>
    %5 = tpu.matmul %3, %4, %cst {dimension_numbers = #tpu.dot_dimension_numbers<[1], [0], [0], [1], [0, 0, 1, 1], [], []>} : vector<128x16xbf16>, vector<16x4xbf16>, vector<128x4xf32> -> vector<128x4xf32>
    %c0_4 = arith.constant 0 : index
    %c0_5 = arith.constant 0 : index
    %6 = vector.load %arg3[%c0_4, %c0_5] : memref<128x4xf32, #tpu.memory_space<vmem>>, vector<128x4xf32>
    tpu.vector_store %arg3[%c0_4, %c0_5], %5 {strides = array<i32>} : memref<128x4xf32, #tpu.memory_space<vmem>>, vector<128x4xf32>,
    %c0_6 = arith.constant 0 : index
    %c0_7 = arith.constant 0 : index
    %7 = vector.load %arg6[%c0_6, %c0_7] : memref<1x4xf32, #tpu.memory_space<vmem>>, vector<1x4xf32>
    %cst_8 = arith.constant dense<0.000000e+00> : vector<4xf32>
    %8 = vector.multi_reduction <add>, %5, %cst_8 [0] : vector<128x4xf32> to vector<4xf32>
    %9 = vector.shape_cast %8 : vector<4xf32> to vector<1x4xf32>
    %10 = arith.addf %7, %9 : vector<1x4xf32>
    %c0_9 = arith.constant 0 : index
    %c0_10 = arith.constant 0 : index
    %11 = vector.load %arg6[%c0_9, %c0_10] : memref<1x4xf32, #tpu.memory_space<vmem>>, vector<1x4xf32>
    tpu.vector_store %arg6[%c0_9, %c0_10], %10 {strides = array<i32>} : memref<1x4xf32, #tpu.memory_space<vmem>>, vector<1x4xf32>,
    %c0_11 = arith.constant 0 : index
    %c0_12 = arith.constant 0 : index
    %12 = vector.load %arg7[%c0_11, %c0_12] : memref<1x4xf32, #tpu.memory_space<vmem>>, vector<1x4xf32>
    %13 = arith.mulf %5, %5 : vector<128x4xf32>
    %cst_13 = arith.constant dense<0.000000e+00> : vector<4xf32>
    %14 = vector.multi_reduction <add>, %13, %cst_13 [0] : vector<128x4xf32> to vector<4xf32>
    %15 = vector.shape_cast %14 : vector<4xf32> to vector<1x4xf32>
    %16 = arith.addf %12, %15 : vector<1x4xf32>
    %c0_14 = arith.constant 0 : index
    %c0_15 = arith.constant 0 : index
    %17 = vector.load %arg7[%c0_14, %c0_15] : memref<1x4xf32, #tpu.memory_space<vmem>>, vector<1x4xf32>
    tpu.vector_store %arg7[%c0_14, %c0_15], %16 {strides = array<i32>} : memref<1x4xf32, #tpu.memory_space<vmem>>, vector<1x4xf32>,
    %c3_i32 = arith.constant 3 : i32
    %18 = arith.cmpi eq, %arg0, %c3_i32 : i32
    %19 = arith.extui %18 : i1 to i32
    %c0_i32_16 = arith.constant 0 : i32
    %20 = arith.cmpi ne, %19, %c0_i32_16 : i32
    scf.if %20 {
      %c0_17 = arith.constant 0 : index
      %c0_18 = arith.constant 0 : index
      %21 = vector.load %arg6[%c0_17, %c0_18] : memref<1x4xf32, #tpu.memory_space<vmem>>, vector<1x4xf32>
      %c0_19 = arith.constant 0 : index
      %c0_20 = arith.constant 0 : index
      %22 = vector.load %arg4[%c0_19, %c0_20] : memref<1x4xf32, #tpu.memory_space<vmem>>, vector<1x4xf32>
      tpu.vector_store %arg4[%c0_19, %c0_20], %21 {strides = array<i32>} : memref<1x4xf32, #tpu.memory_space<vmem>>, vector<1x4xf32>,
      %c0_21 = arith.constant 0 : index
      %c0_22 = arith.constant 0 : index
      %23 = vector.load %arg7[%c0_21, %c0_22] : memref<1x4xf32, #tpu.memory_space<vmem>>, vector<1x4xf32>
      %c0_23 = arith.constant 0 : index
      %c0_24 = arith.constant 0 : index
      %24 = vector.load %arg5[%c0_23, %c0_24] : memref<1x4xf32, #tpu.memory_space<vmem>>, vector<1x4xf32>
      tpu.vector_store %arg5[%c0_23, %c0_24], %23 {strides = array<i32>} : memref<1x4xf32, #tpu.memory_space<vmem>>, vector<1x4xf32>,
    } else {
    }
    return
  }
  func.func @transform_0(%arg0: i32) -> (i32, i32) {
    %c0_i32 = arith.constant 0 : i32
    %c0_i32_0 = arith.constant 0 : i32
    return %arg0, %c0_i32 : i32, i32
  }
  func.func @transform_1(%arg0: i32) -> (i32, i32) {
    %c0_i32 = arith.constant 0 : i32
    %c0_i32_0 = arith.constant 0 : i32
    %c0_i32_1 = arith.constant 0 : i32
    return %c0_i32, %c0_i32_0 : i32, i32
  }
  func.func @transform_2(%arg0: i32) -> (i32, i32) {
    %c0_i32 = arith.constant 0 : i32
    %c0_i32_0 = arith.constant 0 : i32
    return %arg0, %c0_i32 : i32, i32
  }
  func.func @transform_3(%arg0: i32) -> (i32, i32) {
    %c0_i32 = arith.constant 0 : i32
    %c0_i32_0 = arith.constant 0 : i32
    %c0_i32_1 = arith.constant 0 : i32
    return %c0_i32, %c0_i32_0 : i32, i32
  }
  func.func @transform_4(%arg0: i32) -> (i32, i32) {
    %c0_i32 = arith.constant 0 : i32
    %c0_i32_0 = arith.constant 0 : i32
    %c0_i32_1 = arith.constant 0 : i32
    return %c0_i32, %c0_i32_0 : i32, i32
  }
}

</mosaic_0001>

<bundles_post_ra>
// kernel: tpu_custom_call.1
= control target key start
LH: loop header
LB: loop body
LE: loop exit
PB: predicated region body
PF: predicated region fallthrough
CT: control target
= control target key end

     0   :  { %10 = vsyncpa [#allocation5], 0  ;;  %s963_s0 = inlined_call_operand.vmem [shape: bf16[512,16], index: 0, kind: input, shape index: {}]   ;;  %s964_s1 = inlined_call_operand.vmem [shape: bf16[16,4], index: 1, kind: input, shape index: {}]   ;;  %s965_s2 = inlined_call_operand.vmem [shape: f32[512,4], index: 2, kind: output, shape index: {0}]   ;;  %s966_s3 = inlined_call_operand.hbm [shape: f32[1,4], index: 3, kind: output, shape index: {1}]   ;;  %s967_s4 = inlined_call_operand.hbm [shape: f32[1,4], index: 4, kind: output, shape index: {2}]  }
   0x1   :  { %11 = vsyncpa [#allocation7], 0  ;;  %s807_s15 = smov 0  }
   0x2 LB: > { %s813_s16 = sadd.s32 4294967295, %s777_s15   ;;  %p620_p0 = scmp.ge.s32.totalorder %s777_s15, 1  ;;  %s777_s15 = sphi %s807_s15, %s17_s15  }
   0x3   : > { %p160_p1 = scmp.lt.s32.totalorder %s777_s15, 5 }
   0x5   : > { %p161_p2 = pnand %p620_p0, %p160_p1 }
   0x6   : > { %s621_s17 = sshll.u32 (!%p161_p2), %s813_s16, 4  ;;  %p625_p4 = scmp.ne.s32.totalorder (!%p161_p2), %s813_s16, 0 }
   0x7   : > { %164 = sbr.rel (%p161_p2) target bundleno = 345 (0x159), region = 28  ;;  %p187_p3 = scmp.lt.s32.totalorder (!%p161_p2), %s621_s17, 63 }
   0xe   : > { %s969_s17 = smov (!%p187_p3, %s621_s17), 63  ;;  %202 = sbr.rel (%p625_p4) target bundleno = 21 (0x15), region = 32 }
   0xf   : > { %s622_s18 = sshll.u32 %s969_s17, 2  ;;  %s624_s19 = sshll.u32 %s969_s17, 3  ;;  %vm203_vm0 = vcmask (!%p625_p4), 24576   ;;  %v779_v0 = vmov (!%p625_p4), 0.0  }
  0x10   : > { %s190_s22 = scalar_lea.vmem %s963_s0, %s622_s18  ;;  %s824_s25 = scalar_lea.vmem %s965_s2, %s624_s19  ;;  %204 = vst.msk [vmem:[#allocation2] sm:$0x1] (!%p625_p4), %vm203_vm0, %v779_v0  ;;  %205 = vst.msk [vmem:[#allocation3] sm:$0x1] (!%p625_p4), %vm203_vm0, %v779_v0 }
  0x15 PF: > { %v702_v1 = vld [vmem:[%s964_s1] sm:$0xff]   ;;  %vm270_vm1 = vcmask 130048   ;;  %v704_v3 = vld [vmem:[%s190_s22 + $0x8] sm:$0xff]   ;;  %v705_v4 = vld [vmem:[%s190_s22 + $0x10] sm:$0xff]   ;;  %vm392_vm2 = vcmask 31744   ;;  %vm448_vm3 = vcmask 24576  }
  0x16   : > { %v703_v2 = vld [vmem:[%s190_s22] sm:$0xff]   ;;  %659 = vmatprep.subr.bf16.mxu0 %v702_v1  ;;  %677 = vmatprep.subr.bf16.mxu1 %v702_v1  ;;  %v708_v6 = vld [vmem:[%s190_s22 + $0x28] sm:$0xff]   ;;  %v709_v7 = vld [vmem:[%s190_s22 + $0x30] sm:$0xff]   ;;  %p643_p5 = scmp.ne.s32.totalorder %s813_s16, 3 }
  0x17   : > { %660 = vmatpush3.bf16.msra.mxu0 %v702_v1  ;;  %661 = vmatprep.mubr.msk.bf16.mxu0 %vm270_vm1, %v703_v2  ;;  %v707_v5 = vld [vmem:[%s190_s22 + $0x20] sm:$0xff]   ;;  %v706_v8 = vld [vmem:[%s190_s22 + $0x18] sm:$0xff]  }
  0x18   : > { %678 = vmatpush3.bf16.msra.mxu1 %v702_v1  ;;  %669 = vmatprep.mubr.msk.bf16.mxu1 %vm270_vm1, %v707_v5  ;;  %v710_v9 = vld [vmem:[%s190_s22 + $0x38] sm:$0xff]  }
  0x1a   : > { %662 = vmatmul.mubr.msk.bf16.vlgmr.msra.gmra.mrb[0].mxu0 %vm270_vm1, %v704_v3 }
  0x1b   : > { %665 = vmatprep.mubr.msk.bf16.mxu0 %vm270_vm1, %v705_v4  ;;  %670 = vmatmul.mubr.msk.bf16.vlgmr.msra.gmra.mrb[0].mxu1 %vm270_vm1, %v708_v6 }
  0x1c   : > { %673 = vmatprep.mubr.msk.bf16.mxu1 %vm270_vm1, %v709_v7 }
  0x22   : > { %666 = vmatmul.mubr.msk.bf16.gmra.mrb[4].mxu0 %vm270_vm1, %v706_v8 }
  0x23   : > { %674 = vmatmul.mubr.msk.bf16.gmra.mrb[4].mxu1 %vm270_vm1, %v710_v9 }
  0xed   : > { %v663_v10 = vpop.f32.mrb[0].mxu0 }
  0xee   : > { %395 = vst.msk [vmem:[%s824_s25 + $0x10] sm:$0xff] %vm392_vm2, %v663_v10  ;;  %v329_v11 = vpop.f32.mrb[1].mxu0  ;;  %v842_v14 = vpop.f32.mrb[0].mxu1  ;;  %v453_v17 = vmul.f32 %v663_v10, %v663_v10  ;;  %v413_v24 = vsel %vm392_vm2, %v663_v10, 0.0 }
  0xef   : > { %393 = vst.msk [vmem:[%s824_s25] sm:$0xff] %vm392_vm2, %v329_v11  ;;  %v451_v12 = vmul.f32 %v329_v11, %v329_v11  ;;  %v664_v13 = vpop.f32.mrb[2].mxu0  ;;  %403 = vst.msk [vmem:[%s824_s25 + $0x50] sm:$0xff] %vm392_vm2, %v842_v14  ;;  %v361_v16 = vpop.f32.mrb[1].mxu1  ;;  %v410_v18 = vsel %vm392_vm2, %v329_v11, 0.0  ;;  %v461_v5 = vmul.f32 %v842_v14, %v842_v14  ;;  %v429_v9 = vsel %vm392_vm2, %v842_v14, 0.0 }
  0xf0   : > { %396 = vst.msk [vmem:[%s824_s25 + $0x18] sm:$0xff] %vm392_vm2, %v664_v13  ;;  %v332_v15 = vpop.f32.mrb[3].mxu0  ;;  %401 = vst.msk [vmem:[%s824_s25 + $0x40] sm:$0xff] %vm392_vm2, %v361_v16  ;;  %v855_v21 = vpop.f32.mrb[2].mxu1  ;;  %v454_v26 = vmul.f32 %v664_v13, %v664_v13  ;;  %v470_v30 = vsel %vm392_vm2, %v453_v17, 0.0  ;;  %v415_v31 = vsel %vm392_vm2, %v664_v13, 0.0  ;;  %v459_v56 = vmul.f32 %v361_v16, %v361_v16 }
  0xf1   : > { %394 = vst.msk [vmem:[%s824_s25 + $0x8] sm:$0xff] %vm392_vm2, %v332_v15  ;;  %v411_v19 = vsel %vm392_vm2, %v332_v15, 0.0  ;;  %v452_v20 = vmul.f32 %v332_v15, %v332_v15  ;;  %404 = vst.msk [vmem:[%s824_s25 + $0x58] sm:$0xff] %vm392_vm2, %v855_v21  ;;  %v364_v23 = vpop.f32.mrb[3].mxu1  ;;  %v467_v25 = vsel %vm392_vm2, %v451_v12, 0.0  ;;  %v425_v61 = vsel %vm392_vm2, %v361_v16, 0.0 }
  0xf2   : > { %v412_v22 = vadd.f32 %v411_v19, %v410_v18  ;;  %402 = vst.msk [vmem:[%s824_s25 + $0x48] sm:$0xff] %vm392_vm2, %v364_v23  ;;  %v472_v36 = vsel %vm392_vm2, %v454_v26, 0.0  ;;  %v482_v1 = vsel %vm392_vm2, %v459_v56, 0.0  ;;  %v460_v2 = vmul.f32 %v364_v23, %v364_v23 }
  0xf3   : > { %v468_v27 = vsel %vm392_vm2, %v452_v20, 0.0  ;;  %v427_v6 = vsel %vm392_vm2, %v364_v23, 0.0  ;;  %v462_v10 = vmul.f32 %v855_v21, %v855_v21  ;;  %v486_v16 = vsel %vm392_vm2, %v461_v5, 0.0 }
  0xf4   : > { %v414_v28 = vadd.f32 %v413_v24, %v412_v22  ;;  %v469_v29 = vadd.f32 %v468_v27, %v467_v25  ;;  %v484_v11 = vsel %vm392_vm2, %v460_v2, 0.0  ;;  %v431_v17 = vsel %vm392_vm2, %v855_v21, 0.0 }
  0xf5   : > { %v667_v32 = vpop.f32.mrb[4].mxu0  ;;  %v488_v22 = vsel %vm392_vm2, %v462_v10, 0.0 }
  0xf6   : > { %v471_v33 = vadd.f32 %v470_v30, %v469_v29  ;;  %399 = vst.msk [vmem:[%s824_s25 + $0x30] sm:$0xff] %vm392_vm2, %v667_v32  ;;  %v345_v34 = vpop.f32.mrb[5].mxu0  ;;  %v416_v35 = vadd.f32 %v415_v31, %v414_v28  ;;  %v675_v40 = vpop.f32.mrb[4].mxu1  ;;  %v457_v45 = vmul.f32 %v667_v32, %v667_v32  ;;  %v421_v53 = vsel %vm392_vm2, %v667_v32, 0.0 }
  0xf7   : > { %397 = vst.msk [vmem:[%s824_s25 + $0x20] sm:$0xff] %vm392_vm2, %v345_v34  ;;  %v417_v37 = vsel %vm392_vm2, %v345_v34, 0.0  ;;  %v455_v38 = vmul.f32 %v345_v34, %v345_v34  ;;  %v668_v39 = vpop.f32.mrb[6].mxu0  ;;  %407 = vst.msk [vmem:[%s824_s25 + $0x70] sm:$0xff] %vm392_vm2, %v675_v40  ;;  %v377_v44 = vpop.f32.mrb[5].mxu1  ;;  %v465_v26 = vmul.f32 %v675_v40, %v675_v40  ;;  %v437_v30 = vsel %vm392_vm2, %v675_v40, 0.0 }
  0xf8   : > { %v418_v41 = vadd.f32 %v417_v37, %v416_v35  ;;  %v473_v42 = vadd.f32 %v472_v36, %v471_v33  ;;  %400 = vst.msk [vmem:[%s824_s25 + $0x38] sm:$0xff] %vm392_vm2, %v668_v39  ;;  %v348_v43 = vpop.f32.mrb[7].mxu0  ;;  %405 = vst.msk [vmem:[%s824_s25 + $0x60] sm:$0xff] %vm392_vm2, %v377_v44  ;;  %v676_v49 = vpop.f32.mrb[6].mxu1  ;;  %v458_v54 = vmul.f32 %v668_v39, %v668_v39  ;;  %v478_v59 = vsel %vm392_vm2, %v457_v45, 0.0 }
  0xf9   : > { %v474_v46 = vsel %vm392_vm2, %v455_v38, 0.0  ;;  %398 = vst.msk [vmem:[%s824_s25 + $0x28] sm:$0xff] %vm392_vm2, %v348_v43  ;;  %v419_v47 = vsel %vm392_vm2, %v348_v43, 0.0  ;;  %v456_v48 = vmul.f32 %v348_v43, %v348_v43  ;;  %408 = vst.msk [vmem:[%s824_s25 + $0x78] sm:$0xff] %vm392_vm2, %v676_v49  ;;  %v380_v52 = vpop.f32.mrb[7].mxu1  ;;  %v423_v60 = vsel %vm392_vm2, %v668_v39, 0.0 }
  0xfa   : > { %v475_v50 = vadd.f32 %v474_v46, %v473_v42  ;;  %v420_v51 = vadd.f32 %v419_v47, %v418_v41  ;;  %406 = vst.msk [vmem:[%s824_s25 + $0x68] sm:$0xff] %vm392_vm2, %v380_v52  ;;  %v480_v0 = vsel %vm392_vm2, %v458_v54, 0.0  ;;  %v463_v12 = vmul.f32 %v377_v44, %v377_v44 }
  0xfb   : > { %v476_v55 = vsel %vm392_vm2, %v456_v48, 0.0  ;;  %v433_v18 = vsel %vm392_vm2, %v377_v44, 0.0  ;;  %v464_v23 = vmul.f32 %v380_v52, %v380_v52  ;;  %v435_v27 = vsel %vm392_vm2, %v380_v52, 0.0 }
  0xfc   : > { %v422_v57 = vadd.f32 %v421_v53, %v420_v51  ;;  %v477_v58 = vadd.f32 %v476_v55, %v475_v50  ;;  %v490_v14 = vsel %vm392_vm2, %v463_v12, 0.0  ;;  %v466_v31 = vmul.f32 %v676_v49, %v676_v49  ;;  %v409_v50 = vld [vmem:[#allocation2] sm:$0x1]  ;;  %v450_v53 = vld [vmem:[#allocation3] sm:$0x1] }
  0xfd   : > { %v492_v21 = vsel %vm392_vm2, %v464_v23, 0.0  ;;  %v494_v34 = vsel %vm392_vm2, %v465_v26, 0.0  ;;  %v439_v35 = vsel %vm392_vm2, %v676_v49, 0.0 }
  0xfe   : > { %v479_v62 = vadd.f32 %v478_v59, %v477_v58  ;;  %v424_v63 = vadd.f32 %v423_v60, %v422_v57  ;;  %v496_v38 = vsel %vm392_vm2, %v466_v31, 0.0 }
 0x100   : > { %v426_v3 = vadd.f32 %v425_v61, %v424_v63  ;;  %v481_v4 = vadd.f32 %v480_v0, %v479_v62 }
 0x102   : > { %v483_v7 = vadd.f32 %v482_v1, %v481_v4  ;;  %v428_v8 = vadd.f32 %v427_v6, %v426_v3 }
 0x104   : > { %v430_v13 = vadd.f32 %v429_v9, %v428_v8  ;;  %v485_v15 = vadd.f32 %v484_v11, %v483_v7 }
 0x106   : > { %v487_v19 = vadd.f32 %v486_v16, %v485_v15  ;;  %v432_v20 = vadd.f32 %v431_v17, %v430_v13 }
 0x108   : > { %v434_v24 = vadd.f32 %v433_v18, %v432_v20  ;;  %v489_v25 = vadd.f32 %v488_v22, %v487_v19 }
 0x10a   : > { %v491_v28 = vadd.f32 %v490_v14, %v489_v25  ;;  %v436_v29 = vadd.f32 %v435_v27, %v434_v24 }
 0x10c   : > { %v438_v32 = vadd.f32 %v437_v30, %v436_v29  ;;  %v493_v33 = vadd.f32 %v492_v21, %v491_v28 }
 0x10e   : > { %v440_v36 = vadd.f32 %v439_v35, %v438_v32  ;;  %v495_v37 = vadd.f32 %v494_v34, %v493_v33 }
 0x110   : > { %v441_v39 = vrot.slane %v440_v36, 4  ;;  %v497_v41 = vadd.f32 %v496_v38, %v495_v37 }
 0x112   : > { %v442_v42 = vadd.f32 %v441_v39, %v440_v36  ;;  %v498_v43 = vrot.slane %v497_v41, 4 }
 0x114   : > { %v443_v44 = vrot.slane %v442_v42, 2  ;;  %v499_v45 = vadd.f32 %v498_v43, %v497_v41 }
 0x116   : > { %v444_v40 = vadd.f32 %v443_v44, %v442_v42  ;;  %v500_v46 = vrot.slane %v499_v45, 2 }
 0x118   : > { %v445_v47 = vrot.slane %v444_v40, 1  ;;  %v501_v48 = vadd.f32 %v500_v46, %v499_v45 }
 0x11a   : > { %v446_v51 = vadd.f32 %v445_v47, %v444_v40  ;;  %v502_v52 = vrot.slane %v501_v48, 1  ;;  %509 = sbr.rel (%p643_p5) target bundleno = 297 (0x129), region = 36 }
 0x11c   : > { %v447_v49 = vadd.f32 %v446_v51, %v409_v50  ;;  %v503_v54 = vadd.f32 %v502_v52, %v501_v48 }
 0x11e   : > { %449 = vst.msk [vmem:[#allocation2] sm:$0x1] %vm448_vm3, %v447_v49  ;;  %v504_v55 = vadd.f32 %v503_v54, %v450_v53 }
 0x120   : > { %505 = vst.msk [vmem:[#allocation3] sm:$0x1] %vm448_vm3, %v504_v55 }
 0x125   : > { %v510_v56 = vld [vmem:[#allocation2] sm:$0x1] }
 0x126   : > { %511 = vst.msk [vmem:[#allocation4] sm:$0x1] %vm448_vm3, %v510_v56 }
 0x127   : > { %v512_v57 = vld [vmem:[#allocation3] sm:$0x1] }
 0x128   : > { %513 = vst.msk [vmem:[#allocation6] sm:$0x1] %vm448_vm3, %v512_v57 }
 0x129 PF: > { %p687_p6 = scmp.eq.s32.totalorder %s813_s16, 3  ;;  %s780_s28 = smov [#allocation4]  }
 0x12a   : > { %s530_s29 = sshll.u32 %s780_s28, 4  ;;  %s781_s30 = smov [#allocation6]   ;;  %s531_s29 = int_to_ptr.vmem [resolvable:$true] %s530_s29 }
 0x12b   : > { %s541_s5 = sshll.u32 %s781_s30, 4  ;;  %s711_s6 = scalar_lea.vmem %s531_s29, 16  ;;  %s542_s5 = int_to_ptr.vmem [resolvable:$true] %s541_s5 }
 0x12c   : > { %p712_p7 = scmp.ne.s32.totalorder %s531_s29, %s711_s6  ;;  %s717_s7 = scalar_lea.vmem %s531_s29, 32 }
 0x12d   : > { %p718_p10 = scmp.lt.s32.totalorder %s531_s29, %s531_s29  ;;  %p719_p11 = scmp.lt.s32.totalorder %s717_s7, %s711_s6 }
 0x12e   : > { %p713_p8 = pnand %p712_p7, %p687_p6 }
 0x12f   : > { %p720_p12 = por %p719_p11, %p718_p10 }
 0x130   : > { %p714_p9 = pneg %p713_p8 }
 0x132   : > { %p721_p13 = pnand %p720_p12, %p714_p9 }
 0x134   : > { %724 = shalt.err (!%p721_p13)
}
 0x135   : > { %s725_s10 = scalar_lea.hbm %s966_s3, 16 }
 0x136   : > { %p726_p0 = scmp.ne.s32.totalorder %s966_s3, %s725_s10  ;;  %p731_p3 = scmp.lt.u32.totalorder %s725_s10, %s966_s3 }
 0x138   : > { %p727_p1 = pnand %p726_p0, %p687_p6 }
 0x13a   : > { %p728_p2 = pneg %p727_p1 }
 0x13c   : > { %p733_p4 = pnand %p731_p3, %p728_p2 }
 0x13e   : > { %736 = shalt.err (!%p733_p4)
}
 0x13f   : > { %680 = dma.vmem_to_hbm [thread:$0]  (%p687_p6), %s531_s29, 16, %s966_s3, [#allocation5]  }
 0x140   : > { %s737_s19 = scalar_lea.vmem %s542_s5, 16  ;;  %s743_s20 = scalar_lea.vmem %s542_s5, 32 }
 0x141   : > { %p738_p5 = scmp.ne.s32.totalorder %s542_s5, %s737_s19  ;;  %p744_p9 = scmp.lt.s32.totalorder %s542_s5, %s542_s5 }
 0x142   : > { %p745_p10 = scmp.lt.s32.totalorder %s743_s20, %s737_s19 }
 0x143   : > { %p739_p7 = pnand %p738_p5, %p687_p6 }
 0x144   : > { %p746_p11 = por %p745_p10, %p744_p9 }
 0x145   : > { %p740_p8 = pneg %p739_p7 }
 0x147   : > { %p747_p12 = pnand %p746_p11, %p740_p8 }
 0x149   : > { %750 = shalt.err (!%p747_p12)
}
 0x14a   : > { %s751_s23 = scalar_lea.hbm %s967_s4, 16 }
 0x14b   : > { %p752_p13 = scmp.ne.s32.totalorder %s967_s4, %s751_s23  ;;  %p757_p2 = scmp.lt.u32.totalorder %s751_s23, %s967_s4 }
 0x14d   : > { %p753_p0 = pnand %p752_p13, %p687_p6 }
 0x14f   : > { %p754_p1 = pneg %p753_p0 }
 0x151   : > { %p759_p3 = pnand %p757_p2, %p754_p1 }
 0x153   : > { %762 = shalt.err (!%p759_p3)
}
 0x154   : > { %682 = dma.vmem_to_hbm [thread:$0]  (%p687_p6), %s542_s5, 16, %s967_s4, [#allocation7]  }
 0x155   : > { %768 = dma.done.wait (%p687_p6), [#allocation5], 16  }
 0x156   : > { %770 = vsyncadd (%p687_p6), [#allocation5], 4294967280 }
 0x157   : > { %772 = dma.done.wait (%p687_p6), [#allocation7], 16  }
 0x158   : > { %774 = vsyncadd (%p687_p6), [#allocation7], 4294967280 }
 0x159 PF: > { %s17_s15 = sadd.s32 1, %s777_s15  }
 0x15a   : > { %p14_p4 = scmp.ge.s32.totalorder %s17_s15, 6  }
 0x15c   :  { %16 = sbr.rel (!%p14_p4) target bundleno = 2 (0x2), region = 83 }
 0x163   :  { %566 = vsyncpa [#allocation5], 1 }
 0x164   :  { %568 = vsyncpa [#allocation5 + $0x1], 1 }
 0x165   :  { %569 = vsyncpa [#allocation7], 1 }

</bundles_post_ra>
